<compile_context>
chip_gen: v6e
topology: v6e:2x2x1
jax: 0.10.0
libtpu: 0.0.40
codegen_flags: <defaults>
</compile_context>

<pallas_src>
import jax
import jax.numpy as jnp
from jax import lax
from jax.experimental import pallas as pl
from jax.experimental.pallas import tpu as pltpu

_OUT_ROWS = 8  # fc2 output padded to 8 sublanes; true logits live in rows [:2]


def _round_up(x, m):
    return (x + m - 1) // m * m


def _vmem_capacity_bytes():
    try:
        return int(pltpu.get_tpu_info().vmem_capacity_bytes)
    except Exception:
        return 64 << 20  # conservative fallback (v7x per-core VMEM)


def _head_kernel(ha_ref, hb_ref, w1a_ref, w1b_ref, w1c_ref, b1_ref,
                 w2t_ref, b2_ref, out_ref):
    """One batch tile; fc1 weight split into [h_a | h_b | dotp] blocks.

    Output block is (8, tb): fc2 result transposed so the batch dim is
    lane-dense (unmasked vector stores for full tiles)."""
    ha = ha_ref[...]                                              # [TB, T]
    hb = hb_ref[...]                                              # [TB, T]
    dotp = jnp.sum(ha.astype(jnp.float32) * hb.astype(jnp.float32),
                   axis=-1, keepdims=True)                        # [TB, 1]
    z1 = (jnp.dot(ha, w1a_ref[...], preferred_element_type=jnp.float32)
          + jnp.dot(hb, w1b_ref[...], preferred_element_type=jnp.float32)
          + dotp * w1c_ref[...]
          + b1_ref[...])                                          # [TB, T]
    z1 = jnp.maximum(z1, 0.0)           # ReLU; dropout = identity in eval
    # fc2, transposed: [8, T] x [TB, T] contracting on T -> [8, TB]
    out_ref[...] = (lax.dot_general(
        w2t_ref[...], z1.astype(w2t_ref.dtype),
        dimension_numbers=(((1,), (1,)), ((), ())),
        preferred_element_type=jnp.float32) + b2_ref[...])        # [8, TB]


def model_head(h_a, h_b, w1, b1, w2, b2, *, compute_dtype=jnp.float32,
               max_block_b=1024):
    """h_a, h_b: [B, T].  w1: [2T+1, T] (in,out).  b1: [T].  w2: [T, 2].  b2: [2]."""
    B, T = h_a.shape
    assert w1.shape == (2 * T + 1, T)
    cd = jnp.dtype(compute_dtype)
    isz = cd.itemsize

    # --- generation-aware VMEM budget ---------------------------------------
    vmem_cap = _vmem_capacity_bytes()
    budget = (3 * vmem_cap) // 4          # ~96 MiB on v5e/v6e, ~48 MiB on v7x

    # double-buffered footprints (Pallas default pipelining)
    w_bytes = 2 * (2 * T * T * isz            # w1a, w1b
                   + 2 * T * 4                # w1c, b1 (f32)
                   + _OUT_ROWS * T * isz      # w2t
                   + _OUT_ROWS * 4)           # b2 (f32)

    def act_bytes(tb):
        return 2 * (2 * tb * T * isz + _OUT_ROWS * tb * 4)

    # --- batch tile: multiple of 128 (lane-dense transposed output) ---------
    tb = max(128, min(_round_up(B, 128), _round_up(max_block_b, 128)))
    if B > 128:
        # guarantee >=2 grid tiles so v7x megacore sharding has work per core
        tb = min(tb, max(128, _round_up((B + 1) // 2, 128)))
    while tb > 128 and act_bytes(tb) + w_bytes > budget:
        tb = max(128, (tb // 2) // 128 * 128)
    num_tiles = (B + tb - 1) // tb            # partial last tile handled by Pallas

    # --- parameter packing ----------------------------------------------------
    ha = h_a if h_a.dtype == cd else h_a.astype(cd)
    hb = h_b if h_b.dtype == cd else h_b.astype(cd)
    w1a = w1[:T].astype(cd)                                   # [T, T]
    w1b = w1[T:2 * T].astype(cd)                              # [T, T]
    w1c = w1[2 * T:2 * T + 1].astype(jnp.float32)             # [1, T]
    b1_2d = b1.reshape(1, T).astype(jnp.float32)              # [1, T]
    # fc2 transposed + padded to 8 sublanes; true logits in rows [:2]
    w2t = jnp.zeros((_OUT_ROWS, T), jnp.float32).at[:2, :].set(w2.T).astype(cd)
    b2p = jnp.zeros((_OUT_ROWS, 1), jnp.float32).at[:2, 0].set(b2)

    vmem_limit = int(min(vmem_cap,
                         max(32 << 20, act_bytes(tb) + w_bytes + (16 << 20))))
    cparams = pltpu.CompilerParams(
        dimension_semantics=("parallel",),    # megacore-shard batch tiles (v7x)
        vmem_limit_bytes=vmem_limit)

    # advisory cost hint for XLA scheduling around the custom call
    flops = int(2 * B * (2 * T) * T + 2 * B * T * _OUT_ROWS + 2 * B * T)
    bytes_accessed = int(2 * B * T * isz
                         + (2 * T * T + _OUT_ROWS * T) * isz + (2 * T + _OUT_ROWS) * 4
                         + _OUT_ROWS * B * 4)
    ce = pl.CostEstimate(flops=flops, transcendentals=0,
                         bytes_accessed=bytes_accessed)

    act_spec = pl.BlockSpec((tb, T), lambda i: (i, 0))
    w_spec = lambda shp: pl.BlockSpec(shp, lambda i: (0, 0))   # VMEM-resident

    out = pl.pallas_call(
        _head_kernel,
        out_shape=jax.ShapeDtypeStruct((_OUT_ROWS, B), jnp.float32),
        grid=(num_tiles,),
        in_specs=[act_spec, act_spec,
                  w_spec((T, T)), w_spec((T, T)), w_spec((1, T)),
                  w_spec((1, T)), w_spec((_OUT_ROWS, T)), w_spec((_OUT_ROWS, 1))],
        out_specs=pl.BlockSpec((_OUT_ROWS, tb), lambda i: (0, i)),
        compiler_params=cparams,
        cost_estimate=ce,
    )(ha, hb, w1a, w1b, w1c, b1_2d, w2t, b2p)

    return out[:2, :].T                       # [B, 2]


def forward(h_a, h_b, params, **kwargs):
    """Mirrors Model.forward's return signature: (logits[B, 2], None)."""
    logits = model_head(h_a, h_b, params["w1"], params["b1"],
                        params["w2"], params["b2"], **kwargs)
    return logits, None


def init_params(key, tree_dim):
    next_to_last = 2 * tree_dim + 1          # use_dot_product=True
    k1, k2, k3, k4 = jax.random.split(key, 4)
    bound1 = 1.0 / jnp.sqrt(next_to_last)
    bound2 = 1.0 / jnp.sqrt(tree_dim)
    # Stored pre-transposed: (in_dim, out_dim)
    w1 = jax.random.uniform(k1, (next_to_last, tree_dim), jnp.float32,
                            -bound1, bound1)
    b1 = jax.random.uniform(k2, (tree_dim,), jnp.float32, -bound1, bound1)
    w2 = jax.random.uniform(k3, (tree_dim, 2), jnp.float32, -bound2, bound2)
    b2 = jax.random.uniform(k4, (2,), jnp.float32, -bound2, bound2)
    return {"w1": w1, "b1": b1, "w2": w2, "b2": b2}


def reference(h_a, h_b, params):
    dotp = jnp.sum(h_a * h_b, axis=-1, keepdims=True)
    h = jnp.concatenate([h_a, h_b, dotp], axis=-1)
    z1 = jnp.maximum(h @ params["w1"] + params["b1"], 0.0)
    return z1 @ params["w2"] + params["b2"]


if __name__ == "__main__":
    key = jax.random.PRNGKey(0)

    # --- test 1: original toy size (module default tree_dim=10), f32 path ---
    tree_dim, batch = 10, 8
    k_ha, k_hb, k_p, key = jax.random.split(key, 4)
    h_a = jax.random.normal(k_ha, (batch, tree_dim), jnp.float32)
    h_b = jax.random.normal(k_hb, (batch, tree_dim), jnp.float32)
    params = init_params(k_p, tree_dim)

    logits, aux = forward(h_a, h_b, params)
    logits = jax.block_until_ready(logits)
    ref = reference(h_a, h_b, params)
    assert logits.shape == (batch, 2)
    assert aux is None
    assert jnp.allclose(logits, ref, atol=1e-4, rtol=1e-4)

    # --- test 2: lane-aligned size -> multi-tile batch grid + partial last tile
    tree_dim2, batch2 = 128, 200     # 200 % 128 != 0 -> masked boundary tile
    k_ha2, k_hb2, k_p2, key = jax.random.split(key, 4)
    h_a2 = jax.random.normal(k_ha2, (batch2, tree_dim2), jnp.float32)
    h_b2 = jax.random.normal(k_hb2, (batch2, tree_dim2), jnp.float32)
    params2 = init_params(k_p2, tree_dim2)

    logits2, _ = forward(h_a2, h_b2, params2)
    logits2 = jax.block_until_ready(logits2)
    ref2 = reference(h_a2, h_b2, params2)
    assert logits2.shape == (batch2, 2)
    assert jnp.allclose(logits2, ref2, atol=1e-2, rtol=1e-2)

    # --- test 3: bf16 compute path (MXU/HBM-friendly), looser tolerance ---
    # NOTE: dotp is computed from bf16-cast h_a/h_b, so it loses precision vs.
    # the f32 reference; tolerance is loosened accordingly.
    logits3, _ = forward(h_a2, h_b2, params2, compute_dtype=jnp.bfloat16)
    logits3 = jax.block_until_ready(logits3)
    assert jnp.allclose(logits3, ref2, atol=5e-2, rtol=5e-2)

    print("KERNEL_OK")
</pallas_src>

<mosaic_0001>
module attributes {stable_mosaic.version = 11 : i64} {
  func.func @_head_kernel(%arg0: i32, %arg1: memref<128x10xf32, #tpu.memory_space<vmem>>, %arg2: memref<128x10xf32, #tpu.memory_space<vmem>>, %arg3: memref<10x10xf32, #tpu.memory_space<vmem>>, %arg4: memref<10x10xf32, #tpu.memory_space<vmem>>, %arg5: memref<1x10xf32, #tpu.memory_space<vmem>>, %arg6: memref<1x10xf32, #tpu.memory_space<vmem>>, %arg7: memref<8x10xf32, #tpu.memory_space<vmem>>, %arg8: memref<8x1xf32, #tpu.memory_space<vmem>>, %arg9: memref<8x128xf32, #tpu.memory_space<vmem>>) attributes {dimension_semantics = [#tpu.dimension_semantics<parallel>], iteration_bounds = array<i64: 1>, scalar_prefetch = 0 : i64, scratch_operands = 0 : i64, tpu.core_type = #tpu.core_type<tc>, window_params = [{transform_indices = @transform_0, window_bounds = array<i64: 128, 10>}, {transform_indices = @transform_1, window_bounds = array<i64: 128, 10>}, {pipeline_mode = #tpu.pipeline_mode<synchronous>, transform_indices = @transform_2, window_bounds = array<i64: 10, 10>}, {pipeline_mode = #tpu.pipeline_mode<synchronous>, transform_indices = @transform_3, window_bounds = array<i64: 10, 10>}, {pipeline_mode = #tpu.pipeline_mode<synchronous>, transform_indices = @transform_4, window_bounds = array<i64: 1, 10>}, {pipeline_mode = #tpu.pipeline_mode<synchronous>, transform_indices = @transform_5, window_bounds = array<i64: 1, 10>}, {pipeline_mode = #tpu.pipeline_mode<synchronous>, transform_indices = @transform_6, window_bounds = array<i64: 8, 10>}, {pipeline_mode = #tpu.pipeline_mode<synchronous>, transform_indices = @transform_7, window_bounds = array<i64: 8, 1>}, {transform_indices = @transform_8, window_bounds = array<i64: 8, 128>}]} {
    %c0 = arith.constant 0 : index
    %c0_0 = arith.constant 0 : index
    %0 = vector.load %arg1[%c0, %c0_0] : memref<128x10xf32, #tpu.memory_space<vmem>>, vector<128x10xf32>
    %c0_1 = arith.constant 0 : index
    %c0_2 = arith.constant 0 : index
    %1 = vector.load %arg2[%c0_1, %c0_2] : memref<128x10xf32, #tpu.memory_space<vmem>>, vector<128x10xf32>
    %2 = arith.mulf %0, %1 : vector<128x10xf32>
    %cst = arith.constant dense<0.000000e+00> : vector<128xf32>
    %3 = vector.multi_reduction <add>, %2, %cst [1] : vector<128x10xf32> to vector<128xf32>
    %4 = vector.shape_cast %3 : vector<128xf32> to vector<128x1xf32>
    %c0_3 = arith.constant 0 : index
    %c0_4 = arith.constant 0 : index
    %5 = vector.load %arg3[%c0_3, %c0_4] : memref<10x10xf32, #tpu.memory_space<vmem>>, vector<10x10xf32>
    %cst_5 = arith.constant dense<0.000000e+00> : vector<128x10xf32>
    %6 = tpu.matmul %0, %5, %cst_5 {dimension_numbers = #tpu.dot_dimension_numbers<[1], [0], [0], [1], [0, 0, 1, 1], [], []>} : vector<128x10xf32>, vector<10x10xf32>, vector<128x10xf32> -> vector<128x10xf32>
    %c0_6 = arith.constant 0 : index
    %c0_7 = arith.constant 0 : index
    %7 = vector.load %arg4[%c0_6, %c0_7] : memref<10x10xf32, #tpu.memory_space<vmem>>, vector<10x10xf32>
    %cst_8 = arith.constant dense<0.000000e+00> : vector<128x10xf32>
    %8 = tpu.matmul %1, %7, %cst_8 {dimension_numbers = #tpu.dot_dimension_numbers<[1], [0], [0], [1], [0, 0, 1, 1], [], []>} : vector<128x10xf32>, vector<10x10xf32>, vector<128x10xf32> -> vector<128x10xf32>
    %9 = arith.addf %6, %8 : vector<128x10xf32>
    %c0_9 = arith.constant 0 : index
    %c0_10 = arith.constant 0 : index
    %10 = vector.load %arg5[%c0_9, %c0_10] : memref<1x10xf32, #tpu.memory_space<vmem>>, vector<1x10xf32>
    %11 = vector.broadcast %4 : vector<128x1xf32> to vector<128x10xf32>
    %12 = vector.broadcast %10 : vector<1x10xf32> to vector<128x10xf32>
    %13 = arith.mulf %11, %12 : vector<128x10xf32>
    %14 = arith.addf %9, %13 : vector<128x10xf32>
    %c0_11 = arith.constant 0 : index
    %c0_12 = arith.constant 0 : index
    %15 = vector.load %arg6[%c0_11, %c0_12] : memref<1x10xf32, #tpu.memory_space<vmem>>, vector<1x10xf32>
    %16 = vector.broadcast %15 : vector<1x10xf32> to vector<128x10xf32>
    %17 = arith.addf %14, %16 : vector<128x10xf32>
    %cst_13 = arith.constant 0.000000e+00 : f32
    %18 = vector.broadcast %cst_13 : f32 to vector<128x10xf32>
    %19 = arith.maximumf %17, %18 : vector<128x10xf32>
    %c0_14 = arith.constant 0 : index
    %c0_15 = arith.constant 0 : index
    %20 = vector.load %arg7[%c0_14, %c0_15] : memref<8x10xf32, #tpu.memory_space<vmem>>, vector<8x10xf32>
    %cst_16 = arith.constant dense<0.000000e+00> : vector<8x128xf32>
    %21 = tpu.matmul %20, %19, %cst_16 {dimension_numbers = #tpu.dot_dimension_numbers<[1], [1], [0], [0], [0, 0, 1, 0], [], []>} : vector<8x10xf32>, vector<128x10xf32>, vector<8x128xf32> -> vector<8x128xf32>
    %c0_17 = arith.constant 0 : index
    %c0_18 = arith.constant 0 : index
    %22 = vector.load %arg8[%c0_17, %c0_18] : memref<8x1xf32, #tpu.memory_space<vmem>>, vector<8x1xf32>
    %23 = vector.broadcast %22 : vector<8x1xf32> to vector<8x128xf32>
    %24 = arith.addf %21, %23 : vector<8x128xf32>
    %c0_19 = arith.constant 0 : index
    %c0_20 = arith.constant 0 : index
    %25 = vector.load %arg9[%c0_19, %c0_20] : memref<8x128xf32, #tpu.memory_space<vmem>>, vector<8x128xf32>
    tpu.vector_store %arg9[%c0_19, %c0_20], %24 {strides = array<i32>} : memref<8x128xf32, #tpu.memory_space<vmem>>, vector<8x128xf32>,
    return
  }
  func.func @transform_0(%arg0: i32) -> (i32, i32) {
    %c0_i32 = arith.constant 0 : i32
    %c0_i32_0 = arith.constant 0 : i32
    return %arg0, %c0_i32 : i32, i32
  }
  func.func @transform_1(%arg0: i32) -> (i32, i32) {
    %c0_i32 = arith.constant 0 : i32
    %c0_i32_0 = arith.constant 0 : i32
    return %arg0, %c0_i32 : i32, i32
  }
  func.func @transform_2(%arg0: i32) -> (i32, i32) {
    %c0_i32 = arith.constant 0 : i32
    %c0_i32_0 = arith.constant 0 : i32
    %c0_i32_1 = arith.constant 0 : i32
    return %c0_i32, %c0_i32_0 : i32, i32
  }
  func.func @transform_3(%arg0: i32) -> (i32, i32) {
    %c0_i32 = arith.constant 0 : i32
    %c0_i32_0 = arith.constant 0 : i32
    %c0_i32_1 = arith.constant 0 : i32
    return %c0_i32, %c0_i32_0 : i32, i32
  }
  func.func @transform_4(%arg0: i32) -> (i32, i32) {
    %c0_i32 = arith.constant 0 : i32
    %c0_i32_0 = arith.constant 0 : i32
    %c0_i32_1 = arith.constant 0 : i32
    return %c0_i32, %c0_i32_0 : i32, i32
  }
  func.func @transform_5(%arg0: i32) -> (i32, i32) {
    %c0_i32 = arith.constant 0 : i32
    %c0_i32_0 = arith.constant 0 : i32
    %c0_i32_1 = arith.constant 0 : i32
    return %c0_i32, %c0_i32_0 : i32, i32
  }
  func.func @transform_6(%arg0: i32) -> (i32, i32) {
    %c0_i32 = arith.constant 0 : i32
    %c0_i32_0 = arith.constant 0 : i32
    %c0_i32_1 = arith.constant 0 : i32
    return %c0_i32, %c0_i32_0 : i32, i32
  }
  func.func @transform_7(%arg0: i32) -> (i32, i32) {
    %c0_i32 = arith.constant 0 : i32
    %c0_i32_0 = arith.constant 0 : i32
    %c0_i32_1 = arith.constant 0 : i32
    return %c0_i32, %c0_i32_0 : i32, i32
  }
  func.func @transform_8(%arg0: i32) -> (i32, i32) {
    %c0_i32 = arith.constant 0 : i32
    %c0_i32_0 = arith.constant 0 : i32
    return %c0_i32, %arg0 : i32, i32
  }
}

</mosaic_0001>

<bundles_post_ra>
// kernel: tpu_custom_call.1
= control target key start
LH: loop header
LB: loop body
LE: loop exit
PB: predicated region body
PF: predicated region fallthrough
CT: control target
= control target key end

     0   :  { %13 = vsyncpa [#allocation3], 0  ;;  %s1456_s0 = inlined_call_operand.vmem [shape: f32[8,10], index: 0, kind: input, shape index: {}]   ;;  %s1457_s1 = inlined_call_operand.hbm [shape: f32[8,10], index: 1, kind: input, shape index: {}]   ;;  %s1458_s2 = inlined_call_operand.hbm [shape: f32[10,10], index: 2, kind: input, shape index: {}]   ;;  %s1459_s3 = inlined_call_operand.hbm [shape: f32[10,10], index: 3, kind: input, shape index: {}]   ;;  %s1460_s4 = inlined_call_operand.hbm [shape: f32[1,10], index: 4, kind: input, shape index: {}]   ;;  %s1461_s5 = inlined_call_operand.vmem [shape: f32[1,10], index: 5, kind: input, shape index: {}]   ;;  %s1462_s6 = inlined_call_operand.vmem [shape: f32[8,10], index: 6, kind: input, shape index: {}]   ;;  %s1463_s7 = inlined_call_operand.vmem [shape: f32[8,1], index: 7, kind: input, shape index: {}]   ;;  %s1464_s8 = inlined_call_operand.hbm [shape: f32[8,8], index: 8, kind: output, shape index: {}]  }
   0x1   :  { %14 = vsyncpa [#allocation6], 0 }
   0x2   :  { %15 = vsyncpa [#allocation9], 0 }
   0x3   :  { %16 = vsyncpa [#allocation4], 0 }
   0x4   :  { %23 = vsyncadd [#allocation3], 1920  ;;  %s1117_s27 = smov [#allocation5]   ;;  %s1118_s29 = smov [#allocation2]  }
   0x5   :  { %s36_s28 = sshll.u32 %s1117_s27, 4  ;;  %s24_s30 = sshll.u32 %s1118_s29, 4  ;;  %s37_s28 = int_to_ptr.vmem [resolvable:$true] %s36_s28  ;;  %s25_s30 = int_to_ptr.vmem [resolvable:$true] %s24_s30 }
   0x6   :  { %s1017_s9 = scalar_lea.vmem %s37_s28, 256  ;;  %p1022_p1 = scmp.lt.s32.totalorder %s37_s28, %s37_s28 }
   0x7   :  { %p1018_p0 = scmp.ne.s32.totalorder %s37_s28, %s1017_s9  ;;  %p1023_p2 = scmp.lt.s32.totalorder %s1017_s9, %s1017_s9 }
   0x9   :  { %p1024_p3 = por %p1023_p2, %p1022_p1 }
   0xb   :  { %p1025_p4 = pnand %p1024_p3, %p1018_p0 }
   0xd   :  { %1028 = shalt.err (!%p1025_p4)
}
   0xe   :  { %s1119_s10 = smov 128   ;;  %s1120_s11 = smov 8  }
   0xf   :  { %42 = dma.hbm_to_vmem [thread:$0]  %s1458_s2, 256, %s37_s28, [#allocation6], %s1119_s10, %s1119_s10, %s1120_s11  }
  0x10   :  { %s1037_s14 = scalar_lea.vmem %s25_s30, 128  ;;  %s1041_s15 = scalar_lea.vmem %s25_s30, 2048 }
  0x11   :  { %p1038_p5 = scmp.ne.s32.totalorder %s25_s30, %s1037_s14  ;;  %p1042_p6 = scmp.lt.s32.totalorder %s25_s30, %s25_s30 }
  0x12   :  { %p1043_p7 = scmp.lt.s32.totalorder %s1041_s15, %s1037_s14 }
  0x14   :  { %p1044_p8 = por %p1043_p7, %p1042_p6 }
  0x16   :  { %p1045_p9 = pnand %p1044_p8, %p1038_p5 }
  0x18   :  { %1048 = shalt.err (!%p1045_p9)
}
  0x19   :  { %30 = dma.hbm_to_vmem [thread:$0]  %s1457_s1, 128, %s25_s30, [#allocation3], %s1119_s10, %s1119_s10, %s1120_s11  }
  0x1a   :  { %s1121_s18 = smov [#allocation7]   ;;  %s1122_s20 = smov [#allocation8]  }
  0x1b   :  { %s48_s19 = sshll.u32 %s1121_s18, 4  ;;  %s61_s21 = sshll.u32 %s1122_s20, 4  ;;  %s49_s19 = int_to_ptr.vmem [resolvable:$true] %s48_s19  ;;  %s62_s21 = int_to_ptr.vmem [resolvable:$true] %s61_s21 }
  0x1c   :  { %s1057_s22 = scalar_lea.vmem %s49_s19, 256  ;;  %p1062_p11 = scmp.lt.s32.totalorder %s49_s19, %s49_s19 }
  0x1d   :  { %p1058_p10 = scmp.ne.s32.totalorder %s49_s19, %s1057_s22  ;;  %p1063_p12 = scmp.lt.s32.totalorder %s1057_s22, %s1057_s22 }
  0x1f   :  { %p1064_p13 = por %p1063_p12, %p1062_p11 }
  0x21   :  { %p1065_p0 = pnand %p1064_p13, %p1058_p10 }
  0x23   :  { %1068 = shalt.err (!%p1065_p0)
}
  0x24   :  { %54 = dma.hbm_to_vmem [thread:$0]  %s1459_s3, 256, %s49_s19, [#allocation6], %s1119_s10, %s1119_s10, %s1120_s11  }
  0x25   :  { %s1077_s24 = scalar_lea.vmem %s62_s21, 16  ;;  %s1081_s1 = scalar_lea.vmem %s62_s21, 32 }
  0x26   :  { %p1078_p1 = scmp.ne.s32.totalorder %s62_s21, %s1077_s24  ;;  %p1082_p2 = scmp.lt.s32.totalorder %s62_s21, %s62_s21 }
  0x27   :  { %p1083_p3 = scmp.lt.s32.totalorder %s1081_s1, %s1077_s24 }
  0x29   :  { %p1084_p4 = por %p1083_p3, %p1082_p2 }
  0x2b   :  { %p1085_p5 = pnand %p1084_p4, %p1078_p1 }
  0x2d   :  { %1088 = shalt.err (!%p1085_p5)
}
  0x2e   :  { %64 = dma.hbm_to_vmem [thread:$0]  %s1460_s4, 16, %s62_s21, [#allocation9]  }
  0x2f   :  { %1109 = dma.done.wait [#allocation3], 2048  }
  0x30   :  { %1110 = vsyncadd [#allocation3], 4294965248 }
  0x31   :  { %1111 = dma.done.wait [#allocation6], 512  }
  0x32   :  { %1112 = vsyncadd [#allocation6], 4294966784 }
  0x33   :  { %1113 = dma.done.wait [#allocation9], 16  }
  0x34   :  { %1114 = vsyncadd [#allocation9], 4294967280  ;;  %vm232_vm0 = vcmask 1041408   ;;  %vm131_vm1 = vcmask 80896   ;;  %v183_v0 = vld [vmem:[#allocation7 + $0x8] sm:$0x3] }
  0x35   :  { %v182_v1 = vld [vmem:[#allocation7] sm:$0xff]  ;;  %907 = vmatprep.subr.msk.mxu1 %vm232_vm0, %v183_v0  ;;  %v1185_v2 = vld [vmem:[#allocation2] sm:$0xff]  ;;  %v1190_v3 = vld [vmem:[#allocation2 + $0x8] sm:$0xff]  ;;  %vm1124_vm2 = vmmov 0   ;;  %s1126_s12 = smov [#allocation10]  }
  0x36   :  { %908 = vmatpush3.msk.msra.mxu1 %vm232_vm0, %v183_v0  ;;  %911 = vmatprep.mubr.msk.f32.mxu1 %vm131_vm1, %v1185_v2  ;;  %v181_v4 = vld [vmem:[#allocation5 + $0x8] sm:$0x3]  ;;  %v1192_v5 = vld [vmem:[#allocation2 + $0x10] sm:$0xff]  ;;  %v180_v6 = vld [vmem:[#allocation5] sm:$0xff]  ;;  %s790_s13 = sshll.u32 %s1126_s12, 4  ;;  %s791_s13 = int_to_ptr.vmem [resolvable:$true] %s790_s13 }
  0x37   :  { %909 = vmatprep.subr.mxu1 %v182_v1  ;;  %v1200_v7 = vld [vmem:[#allocation2 + $0x18] sm:$0xff]  ;;  %v1202_v8 = vld [vmem:[#allocation2 + $0x20] sm:$0xff]  ;;  %v104_v9 = vld [vmem:[#allocation2 + $0x28] sm:$0xff]  ;;  %s1089_s14 = scalar_lea.vmem %s791_s13, 128  ;;  %p1094_p7 = scmp.lt.s32.totalorder %s791_s13, %s791_s13 }
  0x38   :  { %910 = vmatpush3.msra.mxu1 %v182_v1  ;;  %v105_v10 = vld [vmem:[#allocation2 + $0x30] sm:$0xff]  ;;  %v111_v11 = vld [vmem:[#allocation2 + $0x60] sm:$0xff]  ;;  %v112_v12 = vld [vmem:[#allocation2 + $0x68] sm:$0xff]  ;;  %p1090_p6 = scmp.ne.s32.totalorder %s791_s13, %s1089_s14  ;;  %p1095_p8 = scmp.lt.s32.totalorder %s1089_s14, %s1089_s14 }
  0x39   :  { %912 = vmatmul.mubr.msk.f32.vlgmr.msra.gmra.mxu1 %vm131_vm1, %v1190_v3  ;;  %935 = vmatprep.subr.msk.mxu1 %vm232_vm0, %v181_v4  ;;  %v113_v13 = vld [vmem:[#allocation2 + $0x70] sm:$0xff]  ;;  %v1208_v14 = vld [vmem:[#allocation2 + $0x78] sm:$0xff]  ;;  %v1213_v15 = vld [vmem:[%s1456_s0 + $0x60] sm:$0xff] }
  0x3a   :  { %936 = vmatpush3.msk.msra.mxu1 %vm232_vm0, %v181_v4  ;;  %914 = vmatprep.mubr.msk.f32.mxu1 %vm131_vm1, %v1192_v5  ;;  %v1218_v16 = vld [vmem:[%s1456_s0 + $0x68] sm:$0xff]  ;;  %v1223_v17 = vld [vmem:[%s1456_s0 + $0x78] sm:$0xff]  ;;  %v1228_v18 = vld [vmem:[%s1456_s0 + $0x70] sm:$0xff]  ;;  %v127_v22 = vmul.f32 %v111_v11, %v1213_v15  ;;  %p1096_p9 = por %p1095_p8, %p1094_p7 }
  0x3b   :  { %937 = vmatprep.subr.mxu1 %v180_v6  ;;  %v130_v19 = vmul.f32 %v1208_v14, %v1223_v17  ;;  %v128_v20 = vmul.f32 %v112_v12, %v1218_v16  ;;  %v129_v21 = vmul.f32 %v113_v13, %v1228_v18  ;;  %v106_v23 = vld [vmem:[#allocation2 + $0x38] sm:$0xff]  ;;  %v107_v24 = vld [vmem:[#allocation2 + $0x40] sm:$0xff]  ;;  %v109_v25 = vld [vmem:[#allocation2 + $0x50] sm:$0xff] }
  0x3c   :  { %938 = vmatpush3.msra.mxu1 %v180_v6  ;;  %v110_v28 = vld [vmem:[#allocation2 + $0x58] sm:$0xff]  ;;  %v1242_v29 = vld [vmem:[%s1456_s0 + $0x50] sm:$0xff]  ;;  %v168_v32 = vsel %vm131_vm1, %v127_v22, 0.0  ;;  %v108_v35 = vld [vmem:[#allocation2 + $0x48] sm:$0xff]  ;;  %p1097_p10 = pnand %p1096_p9, %p1090_p6 }
  0x3d   :  { %915 = vmatmul.mubr.msk.f32.gmra.mxu1 %vm131_vm1, %v1200_v7  ;;  %v177_v26 = vsel %vm131_vm1, %v130_v19, 0.0  ;;  %v171_v27 = vsel %vm131_vm1, %v128_v20, 0.0  ;;  %v1247_v30 = vld [vmem:[%s1456_s0 + $0x58] sm:$0xff]  ;;  %v174_v31 = vsel %vm131_vm1, %v129_v21, 0.0  ;;  %v125_v34 = vmul.f32 %v109_v25, %v1242_v29  ;;  %v91_v36 = vld [vmem:[%s1456_s0 + $0x40] sm:$0xff]  ;;  %v92_v37 = vld [vmem:[%s1456_s0 + $0x48] sm:$0xff] }
  0x3e   :  { %917 = vmatprep.mubr.msk.f32.mxu1 %vm131_vm1, %v1202_v8  ;;  %178 = vadd.xlane.f32.xlu0 %v177_v26  ;;  %v126_v33 = vmul.f32 %v110_v28, %v1247_v30  ;;  %v124_v40 = vmul.f32 %v108_v35, %v92_v37  ;;  %v123_v41 = vmul.f32 %v107_v24, %v91_v36  ;;  %v89_v42 = vld [vmem:[%s1456_s0 + $0x30] sm:$0xff]  ;;  %v90_v43 = vld [vmem:[%s1456_s0 + $0x38] sm:$0xff]  ;;  %v87_v48 = vld [vmem:[%s1456_s0 + $0x20] sm:$0xff] }
  0x3f   :  { %172 = vadd.xlane.f32.xlu1 %v171_v27  ;;  %v162_v39 = vsel %vm131_vm1, %v125_v34, 0.0  ;;  %v122_v46 = vmul.f32 %v106_v23, %v90_v43  ;;  %v121_v47 = vmul.f32 %v105_v10, %v89_v42  ;;  %v88_v49 = vld [vmem:[%s1456_s0 + $0x28] sm:$0xff]  ;;  %v119_v53 = vmul.f32 %v1202_v8, %v87_v48  ;;  %v83_v54 = vld [vmem:[%s1456_s0] sm:$0xff]  ;;  %v85_v55 = vld [vmem:[%s1456_s0 + $0x10] sm:$0xff] }
  0x40   :  { %v165_v38 = vsel %vm131_vm1, %v126_v33, 0.0  ;;  %v159_v44 = vsel %vm131_vm1, %v124_v40, 0.0  ;;  %v156_v45 = vsel %vm131_vm1, %v123_v41, 0.0  ;;  %v120_v52 = vmul.f32 %v104_v9, %v88_v49  ;;  %v86_v56 = vld [vmem:[%s1456_s0 + $0x18] sm:$0xff]  ;;  %v84_v61 = vld [vmem:[%s1456_s0 + $0x8] sm:$0xff]  ;;  %v656_v8 = vld [vmem:[%s1463_s7] sm:$0xff] }
  0x41   :  { %918 = vmatmul.mubr.msk.f32.gmra.mxu1 %vm131_vm1, %v104_v9  ;;  %v153_v50 = vsel %vm131_vm1, %v122_v46, 0.0  ;;  %v150_v51 = vsel %vm131_vm1, %v121_v47, 0.0  ;;  %v144_v58 = vsel %vm131_vm1, %v119_v53, 0.0  ;;  %v118_v59 = vmul.f32 %v1200_v7, %v86_v56  ;;  %v1365_v41 = vld [vmem:[#allocation8] ss:$0 sm:$0xff] }
  0x42   :  { %920 = vmatprep.mubr.msk.f32.mxu1 %vm131_vm1, %v105_v10  ;;  %175 = vadd.xlane.f32.xlu0 %v174_v31  ;;  %v147_v57 = vsel %vm131_vm1, %v120_v52, 0.0  ;;  %v117_v60 = vmul.f32 %v1192_v5, %v85_v55  ;;  %v115_v62 = vmul.f32 %v1185_v2, %v83_v54  ;;  %v116_v1 = vmul.f32 %v1190_v3, %v84_v61 }
  0x43   :  { %169 = vadd.xlane.f32.xlu1 %v168_v32  ;;  %v141_v63 = vsel %vm131_vm1, %v118_v59, 0.0  ;;  %v1123_v2 = vmov 0.0   ;;  %v1125_v9 = vmov 0  }
  0x44   :  { %v138_v0 = vsel %vm131_vm1, %v117_v60, 0.0  ;;  %v135_v4 = vsel %vm131_vm1, %v116_v1, 0.0  ;;  %v132_v5 = vsel %vm131_vm1, %v115_v62, 0.0  ;;  %963 = vmatprep.subr.mxu0 %v1123_v2  ;;  %995 = vmatprep.mubr.msk.f32.mxu0 %vm1124_vm2, %v1123_v2 }
  0x45   :  { %921 = vmatmul.mubr.msk.f32.gmra.mxu1 %vm131_vm1, %v106_v23  ;;  %1008 = vset.pattern.permute.xlu0 %v1125_v9 }
  0x46   :  { %923 = vmatprep.mubr.msk.f32.mxu1 %vm131_vm1, %v107_v24  ;;  %166 = vadd.xlane.f32.xlu0 %v165_v38 }
  0x47   :  { %163 = vadd.xlane.f32.xlu1 %v162_v39 }
  0x49   :  { %924 = vmatmul.mubr.msk.f32.gmra.mxu1 %vm131_vm1, %v108_v35 }
  0x4a   :  { %926 = vmatprep.mubr.msk.f32.mxu1 %vm131_vm1, %v109_v25  ;;  %160 = vadd.xlane.f32.xlu0 %v159_v44 }
  0x4b   :  { %157 = vadd.xlane.f32.xlu1 %v156_v45 }
  0x4d   :  { %927 = vmatmul.mubr.msk.f32.gmra.mxu1 %vm131_vm1, %v110_v28 }
  0x4e   :  { %929 = vmatprep.mubr.msk.f32.mxu1 %vm131_vm1, %v111_v11  ;;  %154 = vadd.xlane.f32.xlu0 %v153_v50 }
  0x4f   :  { %151 = vadd.xlane.f32.xlu1 %v150_v51 }
  0x51   :  { %930 = vmatmul.mubr.msk.f32.gmra.mxu1 %vm131_vm1, %v112_v12 }
  0x52   :  { %932 = vmatprep.mubr.msk.f32.mxu1 %vm131_vm1, %v113_v13  ;;  %148 = vadd.xlane.f32.xlu0 %v147_v57 }
  0x53   :  { %145 = vadd.xlane.f32.xlu1 %v144_v58 }
  0x55   :  { %933 = vmatmul.mubr.msk.f32.gmra.mxu1 %vm131_vm1, %v1208_v14 }
  0x56   :  { %939 = vmatprep.mubr.msk.f32.mxu1 %vm131_vm1, %v83_v54  ;;  %142 = vadd.xlane.f32.xlu0 %v141_v63  ;;  %v1373_v54 = vld [vmem:[%s1461_s5] ss:$0 sm:$0xff] }
  0x57   :  { %139 = vadd.xlane.f32.xlu1 %v138_v0 }
  0x59   :  { %940 = vmatmul.mubr.msk.f32.vlgmr.msra.gmra.mxu1 %vm131_vm1, %v84_v61 }
  0x5a   :  { %942 = vmatprep.mubr.msk.f32.mxu1 %vm131_vm1, %v85_v55  ;;  %136 = vadd.xlane.f32.xlu0 %v135_v4 }
  0x5b   :  { %133 = vadd.xlane.f32.xlu1 %v132_v5 }
  0x5d   :  { %943 = vmatmul.mubr.msk.f32.gmra.mxu1 %vm131_vm1, %v86_v56 }
  0x5e   :  { %945 = vmatprep.mubr.msk.f32.mxu1 %vm131_vm1, %v87_v48 }
  0x61   :  { %946 = vmatmul.mubr.msk.f32.gmra.mxu1 %vm131_vm1, %v88_v49 }
  0x62   :  { %948 = vmatprep.mubr.msk.f32.mxu1 %vm131_vm1, %v89_v42 }
  0x65   :  { %949 = vmatmul.mubr.msk.f32.gmra.mxu1 %vm131_vm1, %v90_v43 }
  0x66   :  { %951 = vmatprep.mubr.msk.f32.mxu1 %vm131_vm1, %v91_v36 }
  0x69   :  { %952 = vmatmul.mubr.msk.f32.gmra.mxu1 %vm131_vm1, %v92_v37 }
  0x6a   :  { %954 = vmatprep.mubr.msk.f32.mxu1 %vm131_vm1, %v1242_v29 }
  0x6d   :  { %955 = vmatmul.mubr.msk.f32.gmra.mxu1 %vm131_vm1, %v1247_v30 }
  0x6e   :  { %957 = vmatprep.mubr.msk.f32.mxu1 %vm131_vm1, %v1213_v15 }
  0x70   :  { %659 = vperm.xlu0 %1008, %v656_v8  }
  0x71   :  { %958 = vmatmul.mubr.msk.f32.gmra.mxu1 %vm131_vm1, %v1218_v16 }
  0x72   :  { %960 = vmatprep.mubr.msk.f32.mxu1 %vm131_vm1, %v1228_v18 }
  0x75   :  { %961 = vmatmul.mubr.msk.f32.gmra.mxu1 %vm131_vm1, %v1223_v17 }
  0xc7   :  { %v179_v38 = vpop.xlane.xlu0 %178 }
  0xc8   :  { %v599_v43 = vmul.f32 %v1365_v41, %v179_v38  ;;  %v173_v44 = vpop.xlane.xlu1 %172 }
  0xc9   :  { %v597_v50 = vmul.f32 %v1365_v41, %v173_v44 }
  0xcb   :  { %v176_v45 = vpop.xlane.xlu0 %175 }
  0xcc   :  { %v598_v47 = vmul.f32 %v1365_v41, %v176_v45  ;;  %v170_v55 = vpop.xlane.xlu1 %169 }
  0xcd   :  { %v596_v58 = vmul.f32 %v1365_v41, %v170_v55 }
  0xcf   :  { %v167_v63 = vpop.xlane.xlu0 %166 }
  0xd0   :  { %v595_v0 = vmul.f32 %v1365_v41, %v167_v63 }
  0xf9   :  { %v913_v3 = vpop.f32.mrf.mxu1 }
  0xfb   :  { %v302_v6 = vpop.f32.mrf.mxu1 }
  0xfd   :  { %v916_v7 = vpop.f32.mrf.mxu1 }
  0xff   :  { %v312_v10 = vpop.f32.mrf.mxu1 }
 0x101   :  { %v1337_v11 = vpop.f32.mrf.mxu1 }
 0x103   :  { %v1339_v12 = vpop.f32.mrf.mxu1 }
 0x105   :  { %v1341_v13 = vpop.f32.mrf.mxu1 }
 0x107   :  { %v1343_v14 = vpop.f32.mrf.mxu1 }
 0x109   :  { %v1345_v15 = vpop.f32.mrf.mxu1 }
 0x10b   :  { %v1347_v16 = vpop.f32.mrf.mxu1 }
 0x10d   :  { %v928_v17 = vpop.f32.mrf.mxu1 }
 0x10f   :  { %v352_v18 = vpop.f32.mrf.mxu1 }
 0x111   :  { %v931_v19 = vpop.f32.mrf.mxu1 }
 0x113   :  { %v362_v20 = vpop.f32.mrf.mxu1 }
 0x115   :  { %v934_v21 = vpop.f32.mrf.mxu1 }
 0x117   :  { %v372_v22 = vpop.f32.mrf.mxu1 }
 0x119   :  { %v941_v23 = vpop.f32.mrf.mxu1 }
 0x11a   :  { %v1349_v24 = vadd.f32 %v941_v23, %v913_v3 }
 0x11b   :  { %v498_v25 = vpop.f32.mrf.mxu1 }
 0x11c   :  { %v1351_v26 = vadd.f32 %v498_v25, %v302_v6  ;;  %v164_v6 = vpop.xlane.xlu1 %163 }
 0x11d   :  { %v944_v27 = vpop.f32.mrf.mxu1 }
 0x11e   :  { %v1353_v28 = vadd.f32 %v944_v27, %v916_v7  ;;  %v594_v7 = vmul.f32 %v1365_v41, %v164_v6 }
 0x11f   :  { %v508_v29 = vpop.f32.mrf.mxu1 }
 0x120   :  { %v1355_v30 = vadd.f32 %v508_v29, %v312_v10  ;;  %v158_v27 = vpop.xlane.xlu1 %157 }
 0x121   :  { %v1357_v31 = vpop.f32.mrf.mxu1 }
 0x123   :  { %v1359_v32 = vpop.f32.mrf.mxu1 }
 0x124   :  { %v152_v45 = vpop.xlane.xlu1 %151  ;;  %v519_v55 = vadd.f32 %v1359_v32, %v1339_v12 }
 0x125   :  { %v1361_v33 = vpop.f32.mrf.mxu1 }
 0x127   :  { %v1363_v34 = vpop.f32.mrf.mxu1 }
 0x129   :  { %v953_v35 = vpop.f32.mrf.mxu1 }
 0x12b   :  { %v538_v36 = vpop.f32.mrf.mxu1 }
 0x12d   :  { %v956_v37 = vpop.f32.mrf.mxu1 }
 0x12e   :  { %v554_v1 = vadd.f32 %v956_v37, %v928_v17  ;;  %v539_v37 = vadd.f32 %v538_v36, %v1347_v16  ;;  %v590_v16 = vmul.f32 %v1365_v41, %v152_v45 }
 0x12f   :  { %v548_v39 = vpop.f32.mrf.mxu1 }
 0x130   :  { %v611_v8 = vadd.f32 %v595_v0, %v554_v1  ;;  %v549_v9 = vadd.f32 %v548_v39, %v352_v18  ;;  %v592_v18 = vmul.f32 %v1365_v41, %v158_v27 }
 0x131   :  { %v959_v40 = vpop.f32.mrf.mxu1 }
 0x132   :  { %v564_v51 = vadd.f32 %v959_v40, %v931_v19  ;;  %v610_v23 = vadd.f32 %v594_v7, %v549_v9 }
 0x133   :  { %v558_v42 = vpop.f32.mrf.mxu1 }
 0x134   :  { %v613_v59 = vadd.f32 %v597_v50, %v564_v51  ;;  %v559_v60 = vadd.f32 %v558_v42, %v362_v20  ;;  %v161_v20 = vpop.xlane.xlu0 %160  ;;  %v633_v39 = vadd.f32 %v1373_v54, %v610_v23 }
 0x135   :  { %v962_v46 = vpop.f32.mrf.mxu1  ;;  %v593_v17 = vmul.f32 %v1365_v41, %v161_v20 }
 0x136   :  { %v574_v48 = vadd.f32 %v962_v46, %v934_v21  ;;  %v636_v4 = vadd.f32 %v1373_v54, %v613_v59  ;;  %v612_v5 = vadd.f32 %v596_v58, %v559_v60  ;;  %v544_v21 = vadd.f32 %v953_v35, %v1345_v15 }
 0x137   :  { %v568_v49 = vpop.f32.mrf.mxu1  ;;  %v534_v35 = vadd.f32 %v1361_v33, %v1341_v13  ;;  %v649_v44 = vmax.f32 %v633_v39, 0.0  ;;  %v529_v46 = vadd.f32 %v1363_v34, %v1343_v14  ;;  %v524_v33 = vadd.f32 %v1357_v31, %v1337_v11 }
 0x138   :  { %v615_v52 = vadd.f32 %v599_v43, %v574_v48  ;;  %v569_v53 = vadd.f32 %v568_v49, %v372_v22  ;;  %v652_v10 = vmax.f32 %v636_v4, 0.0  ;;  %v635_v19 = vadd.f32 %v1373_v54, %v612_v5  ;;  %v155_v40 = vpop.xlane.xlu0 %154 }
 0x139   :  { %v634_v22 = vadd.f32 %v1373_v54, %v611_v8  ;;  %v609_v29 = vadd.f32 %v593_v17, %v544_v21  ;;  %v591_v15 = vmul.f32 %v1365_v41, %v155_v40  ;;  %v608_v43 = vadd.f32 %v592_v18, %v539_v37  ;;  %v655_v17 = vld [vmem:[%s1462_s6] sm:$0xff] }
 0x13a   :  { %v614_v56 = vadd.f32 %v598_v47, %v569_v53  ;;  %v638_v57 = vadd.f32 %v1373_v54, %v615_v52  ;;  %v651_v25 = vmax.f32 %v635_v19, 0.0  ;;  %v606_v51 = vadd.f32 %v590_v16, %v529_v46  ;;  %v146_v53 = vpop.xlane.xlu1 %145 }
 0x13b   :  { %v650_v38 = vmax.f32 %v634_v22, 0.0  ;;  %v632_v42 = vadd.f32 %v1373_v54, %v609_v29  ;;  %v607_v36 = vadd.f32 %v591_v15, %v534_v35  ;;  %v631_v48 = vadd.f32 %v1373_v54, %v608_v43 }
 0x13c   :  { %v637_v61 = vadd.f32 %v1373_v54, %v614_v56  ;;  %v654_v62 = vmax.f32 %v638_v57, 0.0  ;;  %v149_v49 = vpop.xlane.xlu0 %148  ;;  %v588_v14 = vmul.f32 %v1365_v41, %v146_v53  ;;  %v629_v57 = vadd.f32 %v1373_v54, %v606_v51 }
 0x13d   :  { %v648_v47 = vmax.f32 %v632_v42, 0.0  ;;  %v589_v13 = vmul.f32 %v1365_v41, %v149_v49  ;;  %v630_v50 = vadd.f32 %v1373_v54, %v607_v36  ;;  %v647_v52 = vmax.f32 %v631_v48, 0.0 }
 0x13e   :  { %964 = vmatpush3.xpose.msk.msra.mxu0 %vm131_vm1, %v654_v62  ;;  %v653_v3 = vmax.f32 %v637_v61, 0.0  ;;  %v604_v59 = vadd.f32 %v588_v14, %v519_v55  ;;  %v645_v60 = vmax.f32 %v629_v57, 0.0  ;;  %v140_v61 = vpop.xlane.xlu1 %139 }
 0x13f   :  { %965 = vmatprep.subr.mxu0 %v1123_v2  ;;  %v605_v34 = vadd.f32 %v589_v13, %v524_v33  ;;  %v646_v56 = vmax.f32 %v630_v50, 0.0  ;;  %v586_v12 = vmul.f32 %v1365_v41, %v140_v61 }
 0x140   :  { %v143_v11 = vpop.xlane.xlu0 %142  ;;  %v627_v63 = vadd.f32 %v1373_v54, %v604_v59 }
 0x141   :  { %v587_v31 = vmul.f32 %v1365_v41, %v143_v11  ;;  %v628_v58 = vadd.f32 %v1373_v54, %v605_v34  ;;  %v602_v5 = vadd.f32 %v586_v12, %v1355_v30 }
 0x142   :  { %966 = vmatpush3.xpose.msk.msra.mxu0 %vm131_vm1, %v653_v3  ;;  %v643_v3 = vmax.f32 %v627_v63, 0.0  ;;  %v134_v6 = vpop.xlane.xlu1 %133 }
 0x143   :  { %967 = vmatprep.subr.mxu0 %v1123_v2  ;;  %v603_v32 = vadd.f32 %v587_v31, %v1353_v28  ;;  %v644_v62 = vmax.f32 %v628_v58, 0.0  ;;  %v584_v7 = vmul.f32 %v1365_v41, %v134_v6  ;;  %v625_v9 = vadd.f32 %v1373_v54, %v602_v5 }
 0x144   :  { %v137_v0 = vpop.xlane.xlu0 %136 }
 0x145   :  { %v585_v1 = vmul.f32 %v1365_v41, %v137_v0  ;;  %v626_v4 = vadd.f32 %v1373_v54, %v603_v32  ;;  %v600_v30 = vadd.f32 %v584_v7, %v1351_v26  ;;  %v641_v19 = vmax.f32 %v625_v9, 0.0 }
 0x146   :  { %968 = vmatpush3.xpose.msk.msra.mxu0 %vm131_vm1, %v652_v10 }
 0x147   :  { %969 = vmatprep.subr.mxu0 %v1123_v2  ;;  %v601_v28 = vadd.f32 %v585_v1, %v1349_v24  ;;  %v642_v8 = vmax.f32 %v626_v4, 0.0  ;;  %v623_v24 = vadd.f32 %v1373_v54, %v600_v30 }
 0x148   :  { %v660_v26 = vpop.permute.xlu0 %659 }
 0x149   :  { %v624_v10 = vadd.f32 %v1373_v54, %v601_v28  ;;  %v639_v41 = vmax.f32 %v623_v24, 0.0 }
 0x14a   :  { %970 = vmatpush3.xpose.msk.msra.mxu0 %vm131_vm1, %v651_v25 }
 0x14b   :  { %971 = vmatprep.subr.mxu0 %v1123_v2  ;;  %v640_v20 = vmax.f32 %v624_v10, 0.0 }
 0x14e   :  { %972 = vmatpush3.xpose.msk.msra.mxu0 %vm131_vm1, %v650_v38 }
 0x14f   :  { %973 = vmatprep.subr.mxu0 %v1123_v2 }
 0x152   :  { %974 = vmatpush3.xpose.msk.msra.mxu0 %vm131_vm1, %v649_v44 }
 0x153   :  { %975 = vmatprep.subr.mxu0 %v1123_v2 }
 0x156   :  { %976 = vmatpush3.xpose.msk.msra.mxu0 %vm131_vm1, %v648_v47 }
 0x157   :  { %977 = vmatprep.subr.mxu0 %v1123_v2 }
 0x15a   :  { %978 = vmatpush3.xpose.msk.msra.mxu0 %vm131_vm1, %v647_v52 }
 0x15b   :  { %979 = vmatprep.subr.mxu0 %v1123_v2 }
 0x15e   :  { %980 = vmatpush3.xpose.msk.msra.mxu0 %vm131_vm1, %v646_v56 }
 0x15f   :  { %981 = vmatprep.subr.mxu0 %v1123_v2 }
 0x162   :  { %982 = vmatpush3.xpose.msk.msra.mxu0 %vm131_vm1, %v645_v60 }
 0x163   :  { %983 = vmatprep.subr.mxu0 %v1123_v2 }
 0x166   :  { %984 = vmatpush3.xpose.msk.msra.mxu0 %vm131_vm1, %v644_v62 }
 0x167   :  { %985 = vmatprep.subr.mxu0 %v1123_v2 }
 0x16a   :  { %986 = vmatpush3.xpose.msk.msra.mxu0 %vm131_vm1, %v643_v3 }
 0x16b   :  { %987 = vmatprep.subr.mxu0 %v1123_v2 }
 0x16e   :  { %988 = vmatpush3.xpose.msk.msra.mxu0 %vm131_vm1, %v642_v8 }
 0x16f   :  { %989 = vmatprep.subr.mxu0 %v1123_v2 }
 0x172   :  { %990 = vmatpush3.xpose.msk.msra.mxu0 %vm131_vm1, %v641_v19 }
 0x173   :  { %991 = vmatprep.subr.mxu0 %v1123_v2 }
 0x176   :  { %992 = vmatpush3.xpose.msk.msra.mxu0 %vm131_vm1, %v640_v20 }
 0x177   :  { %993 = vmatprep.subr.mxu0 %v1123_v2 }
 0x17a   :  { %994 = vmatpush3.xpose.msk.msra.mxu0 %vm131_vm1, %v639_v41 }
 0x17d   :  { %996 = vmatmul.mubr.msk.f32.vlgmr.msra.gmra.mxu0 %vm131_vm1, %v655_v17 }
 0x23d   :  { %v779_v21 = vpop.f32.mrf.mxu0 }
 0x23e   :  { %v780_v22 = vadd.f32 %v779_v21, %v660_v26 }
 0x23f   :  { %v997_v54 = vpop.f32.mrf.mxu0 }
 0x240   :  { %783 = vst [vmem:[#allocation10] sm:$0xff] %v780_v22 }
 0x241   :  { %1100 = shalt.err (!%p1097_p10)
}
 0x242   :  { %793 = dma.vmem_to_hbm [thread:$0]  %s791_s13, 128, %s1464_s8, [#allocation4]  }
 0x243   :  { %1115 = dma.done.wait [#allocation4], 128  }
 0x244   :  { %1116 = vsyncadd [#allocation4], 4294967168 }
 0x245   :  { %797 = vsyncpa [#allocation3], 1 }
 0x246   :  { %798 = vsyncpa [#allocation6], 1 }
 0x247   :  { %799 = vsyncpa [#allocation9], 1 }
 0x248   :  { %800 = vsyncpa [#allocation4], 1 }

</bundles_post_ra>
